<compile_context>
chip_gen: v7x
topology: tpu7x:2x2x1
jax: 0.10.0
libtpu: 0.0.40
codegen_flags: <defaults>
</compile_context>

<pallas_src>
import functools
import numpy as np

import jax
import jax.numpy as jnp
from jax import lax
from jax.experimental import pallas as pl
from jax.experimental.pallas import tpu as pltpu


_DIM_SEM = ("parallel", "parallel", "arbitrary")


# ----------------------------------------------------------------------------
# Pallas kernels
# ----------------------------------------------------------------------------

def _mm_bn_act_kernel(a_ref, b_ref, s_ref, c_ref, *rest, relu, has_res):
    """Tiled matmul: bf16 x bf16 -> f32 accumulated directly into the output block
    (resident across the k axis). Epilogue fuses per-column BN scale/shift, an
    optional residual add and an optional ReLU."""
    if has_res:
        r_ref, o_ref = rest
    else:
        (o_ref,) = rest
    k = pl.program_id(2)

    @pl.when(k == 0)
    def _():
        o_ref[...] = jnp.zeros_like(o_ref)

    o_ref[...] += jnp.dot(a_ref[...], b_ref[...],
                          preferred_element_type=jnp.float32)

    @pl.when(k == pl.num_programs(2) - 1)
    def _():
        out = o_ref[...] * s_ref[...] + c_ref[...]
        if has_res:
            out = out + r_ref[...]
        if relu:
            out = jnp.maximum(out, 0.0)
        o_ref[...] = out


def _conv3x3_s1_kernel(x_ref, w_ref, s_ref, c_ref, o_ref, acc_ref,
                       *, Ho, Wo, dil, relu):
    """Direct 3x3 stride-1 (dilated) conv: 9 statically-shifted (HW,Cin)@(Cin,Cout)
    MXU matmuls accumulated in a VMEM scratch — no HBM im2col.
    Grid = (batch, Cout blocks, Cin blocks); epilogue fuses BN (+ReLU)."""
    kc = pl.program_id(2)

    @pl.when(kc == 0)
    def _():
        acc_ref[...] = jnp.zeros_like(acc_ref)

    acc = acc_ref[...]
    for kh in range(3):
        for kw in range(3):
            a = x_ref[0, kh * dil:kh * dil + Ho, kw * dil:kw * dil + Wo, :]
            a = a.reshape(Ho * Wo, a.shape[-1])
            acc = acc + jnp.dot(a, w_ref[kh, kw],
                                preferred_element_type=jnp.float32)
    acc_ref[...] = acc

    @pl.when(kc == pl.num_programs(2) - 1)
    def _():
        out = acc_ref[...] * s_ref[...] + c_ref[...]
        if relu:
            out = jnp.maximum(out, 0.0)
        o_ref[...] = out.reshape(1, Ho, Wo, out.shape[-1])


def _max_reduce_kernel(p_ref, o_ref):
    # p_ref: (TMP, 9, C) -> max over the window axis
    o_ref[...] = jnp.max(p_ref[...], axis=1)


# ----------------------------------------------------------------------------
# Pallas wrappers
# ----------------------------------------------------------------------------

def _round_up(x, m):
    return ((x + m - 1) // m) * m


def _pad2(x, R, C):
    pr, pc = R - x.shape[0], C - x.shape[1]
    if pr == 0 and pc == 0:
        return x
    return jnp.pad(x, ((0, pr), (0, pc)))


def _mm_tiles(M, K, N):
    """Adaptive tiles: big tiles (few grid steps), no zero-padding of tiny dims."""
    TM = min(512, _round_up(M, 8))
    Mp = _round_up(M, TM)
    Kp = _round_up(K, 16)                 # bf16-friendly sublane dim of B
    if Kp <= 2048:
        TK = Kp                           # single k step, full-extent K block
    else:
        TK = 2048
        Kp = _round_up(K, TK)
    if N < 128:
        TN = Np = N                       # full-extent narrow block, no padding
    else:
        TN = min(512, _round_up(N, 128))
        Np = _round_up(N, TN)
    # keep >=2 parallel blocks where cheap so both v7x TensorCores stay busy
    if Mp // TM == 1 and Np // TN == 1 and TN >= 256 and (TN // 2) % 128 == 0:
        TN //= 2
    return TM, TK, TN, Mp, Kp, Np


def matmul_bn_act(a, b, scale, bias, relu, residual=None):
    """y = relu?((a @ b) * scale + bias [+ residual]) ; scale/bias broadcast over rows.
    A/B are fed to the MXU as bf16; accumulation and epilogue are f32."""
    M, K = a.shape
    N = b.shape[1]
    TM, TK, TN, Mp, Kp, Np = _mm_tiles(M, K, N)

    a_p = _pad2(a.astype(jnp.bfloat16), Mp, Kp)
    b_p = _pad2(b.astype(jnp.bfloat16), Kp, Np)
    s_p = _pad2(scale.reshape(1, -1).astype(jnp.float32), 1, Np)
    c_p = _pad2(bias.reshape(1, -1).astype(jnp.float32), 1, Np)

    ins = [a_p, b_p, s_p, c_p]
    in_specs = [
        pl.BlockSpec((TM, TK), lambda i, j, k: (i, k)),
        pl.BlockSpec((TK, TN), lambda i, j, k: (k, j)),
        pl.BlockSpec((1, TN), lambda i, j, k: (0, j)),
        pl.BlockSpec((1, TN), lambda i, j, k: (0, j)),
    ]
    has_res = residual is not None
    if has_res:
        ins.append(_pad2(residual.astype(jnp.float32), Mp, Np))
        in_specs.append(pl.BlockSpec((TM, TN), lambda i, j, k: (i, j)))

    grid = (Mp // TM, Np // TN, Kp // TK)
    out = pl.pallas_call(
        functools.partial(_mm_bn_act_kernel, relu=relu, has_res=has_res),
        out_shape=jax.ShapeDtypeStruct((Mp, Np), jnp.float32),
        grid_spec=pltpu.PrefetchScalarGridSpec(
            num_scalar_prefetch=0,
            grid=grid,
            in_specs=in_specs,
            out_specs=pl.BlockSpec((TM, TN), lambda i, j, k: (i, j)),
        ),
        compiler_params=pltpu.CompilerParams(dimension_semantics=_DIM_SEM),
    )(*ins)
    return out[:M, :N]


def _im2col(x, KH, KW, stride, dilation, pad, pad_value=0.0):
    """x: NHWC -> patches (N, Ho, Wo, KH*KW, C). Pure data movement (glue).
    Only used for the two stride-2 convs (stem 7x7, layer2[0] conv2) and maxpool."""
    x = jnp.pad(x, ((0, 0), (pad, pad), (pad, pad), (0, 0)),
                constant_values=pad_value)
    N, Hp, Wp, C = x.shape
    eff_kh = dilation * (KH - 1) + 1
    eff_kw = dilation * (KW - 1) + 1
    Ho = (Hp - eff_kh) // stride + 1
    Wo = (Wp - eff_kw) // stride + 1
    cols = []
    for kh in range(KH):
        for kw in range(KW):
            sl = x[:, kh * dilation: kh * dilation + (Ho - 1) * stride + 1: stride,
                   kw * dilation: kw * dilation + (Wo - 1) * stride + 1: stride, :]
            cols.append(sl)
    patches = jnp.stack(cols, axis=3)  # (N, Ho, Wo, KH*KW, C)
    return patches, (Ho, Wo)


def conv2d_bn_act(x, w, scale, bias, stride=1, dilation=1, padding=0, relu=True):
    """General conv (1x1 direct, KxK via im2col) + folded BN affine + optional ReLU.
    x NHWC, w HWIO.  Used for 1x1 convs and the two stride-2 spatial convs."""
    N, H, W, Cin = x.shape
    KH, KW, _, Cout = w.shape
    if KH == 1 and KW == 1 and padding == 0:
        xs = x if stride == 1 else x[:, ::stride, ::stride, :]
        Ho, Wo = xs.shape[1], xs.shape[2]
        a = xs.reshape(N * Ho * Wo, Cin)
    else:
        # TODO(synk): stride>1 spatial convs (stem 7x7 s2, layer2[0] conv2 s2) still
        # materialize im2col patches in HBM; only 2 such convs in the whole net.
        patches, (Ho, Wo) = _im2col(x.astype(jnp.bfloat16), KH, KW,
                                    stride, dilation, padding)
        a = patches.reshape(N * Ho * Wo, KH * KW * Cin)
    y = matmul_bn_act(a, w.reshape(KH * KW * Cin, Cout), scale, bias, relu)
    return y.reshape(N, Ho, Wo, Cout)


def conv3x3_s1_bn_act(x, w, scale, bias, dilation=1, relu=True):
    """3x3 stride-1 conv (padding == dilation, as in ResNet bottlenecks / FCN head)
    via the direct Pallas conv kernel (no HBM im2col)."""
    N, H, W, Cin = x.shape
    _, _, _, Cout = w.shape
    pad = dilation
    Hp, Wp = H + 2 * pad, W + 2 * pad
    Ho, Wo = H, W

    xp = jnp.pad(x.astype(jnp.bfloat16), ((0, 0), (pad, pad), (pad, pad), (0, 0)))
    wb = w.astype(jnp.bfloat16)
    s2 = scale.reshape(1, -1).astype(jnp.float32)
    c2 = bias.reshape(1, -1).astype(jnp.float32)

    TKC = Cin if Cin <= 512 else 512
    TN = Cout if Cout <= 512 else 512
    if Cin % TKC or Cout % TN:           # fallback for shapes we don't tile cleanly
        return conv2d_bn_act(x, w, scale, bias, stride=1, dilation=dilation,
                             padding=pad, relu=relu)

    grid = (N, Cout // TN, Cin // TKC)
    out = pl.pallas_call(
        functools.partial(_conv3x3_s1_kernel, Ho=Ho, Wo=Wo, dil=dilation, relu=relu),
        out_shape=jax.ShapeDtypeStruct((N, Ho, Wo, Cout), jnp.float32),
        grid_spec=pltpu.PrefetchScalarGridSpec(
            num_scalar_prefetch=0,
            grid=grid,
            in_specs=[
                pl.BlockSpec((1, Hp, Wp, TKC), lambda b, j, k: (b, 0, 0, k)),
                pl.BlockSpec((3, 3, TKC, TN), lambda b, j, k: (0, 0, k, j)),
                pl.BlockSpec((1, TN), lambda b, j, k: (0, j)),
                pl.BlockSpec((1, TN), lambda b, j, k: (0, j)),
            ],
            out_specs=pl.BlockSpec((1, Ho, Wo, TN), lambda b, j, k: (b, 0, 0, j)),
            scratch_shapes=[pltpu.VMEM((Ho * Wo, TN), jnp.float32)],
        ),
        compiler_params=pltpu.CompilerParams(dimension_semantics=_DIM_SEM),
    )(xp, wb, s2, c2)
    return out


def maxpool_3x3_s2p1(x):
    """MaxPool2d(kernel=3, stride=2, padding=1): window extraction is glue, the
    9-way max runs in a gridded / pipelined Pallas kernel."""
    N, H, W, C = x.shape
    patches, (Ho, Wo) = _im2col(x, 3, 3, 2, 1, 1, pad_value=-jnp.inf)
    M = N * Ho * Wo
    p = patches.reshape(M, 9, C)
    TMP = min(256, _round_up(M, 8))
    Mp = _round_up(M, TMP)
    if Mp != M:
        p = jnp.pad(p, ((0, Mp - M), (0, 0), (0, 0)), constant_values=-jnp.inf)
    out = pl.pallas_call(
        _max_reduce_kernel,
        out_shape=jax.ShapeDtypeStruct((Mp, C), x.dtype),
        grid_spec=pltpu.PrefetchScalarGridSpec(
            num_scalar_prefetch=0,
            grid=(Mp // TMP,),
            in_specs=[pl.BlockSpec((TMP, 9, C), lambda i: (i, 0, 0))],
            out_specs=pl.BlockSpec((TMP, C), lambda i: (i, 0)),
        ),
        compiler_params=pltpu.CompilerParams(dimension_semantics=("parallel",)),
    )(p)
    return out[:M].reshape(N, Ho, Wo, C)


def _bilinear_matrix(out_size, in_size):
    """Interpolation matrix matching F.interpolate(mode='bilinear', align_corners=False)."""
    i = np.arange(out_size, dtype=np.float64)
    src = (i + 0.5) * (in_size / out_size) - 0.5
    src = np.maximum(src, 0.0)
    i0 = np.minimum(np.floor(src).astype(np.int64), in_size - 1)
    i1 = np.minimum(i0 + 1, in_size - 1)
    w1 = (src - i0).astype(np.float32)
    w0 = 1.0 - w1
    A = np.zeros((out_size, in_size), np.float32)
    A[np.arange(out_size), i0] += w0
    A[np.arange(out_size), i1] += w1
    return A


def upsample_bilinear_to_nchw(x_nhwc, H_out, W_out):
    """Bilinear upsample as ONE Pallas matmul against kron(Ah, Aw); returns NCHW."""
    N, h, w, C = x_nhwc.shape
    Ah = _bilinear_matrix(H_out, h)
    Aw = _bilinear_matrix(W_out, w)
    # TODO(synk): kron matrix scales as (H_out*W_out)x(h*w); for large inputs switch
    # back to a separable two-pass (per-axis) interpolation matmul.
    Kmat = jnp.asarray(np.kron(Ah, Aw))                       # (H_out*W_out, h*w)
    xf = jnp.transpose(x_nhwc, (1, 2, 0, 3)).reshape(h * w, N * C)
    ones = jnp.ones((N * C,), jnp.float32)
    zeros = jnp.zeros((N * C,), jnp.float32)
    y = matmul_bn_act(Kmat, xf, ones, zeros, relu=False)      # (H_out*W_out, N*C)
    y = y.reshape(H_out, W_out, N, C)
    return jnp.transpose(y, (2, 3, 0, 1))                     # (N, C, H_out, W_out)


# ----------------------------------------------------------------------------
# Model definition: ResNet-50 (dilated, output-stride 8) + FCN head
# ----------------------------------------------------------------------------

# (planes, num_blocks, stride, replace_stride_with_dilation) — torchvision fcn_resnet50
CFG = [(64, 3, 1, False), (128, 4, 2, False), (256, 6, 2, True), (512, 3, 2, True)]


def _block_plan():
    plan, dilation, inplanes = [], 1, 64
    for planes, blocks, stride, dilate in CFG:
        prev = dilation
        if dilate:
            dilation *= stride
            stride = 1
        lp = []
        for bi in range(blocks):
            bstride = stride if bi == 0 else 1
            bdil = prev if bi == 0 else dilation
            has_ds = bi == 0 and (bstride != 1 or inplanes != planes * 4)
            lp.append((bstride, bdil, has_ds))
            inplanes = planes * 4
        plan.append(lp)
    return plan


PLAN = _block_plan()


def _conv_w(key, kh, kw, cin, cout):
    std = (2.0 / (kh * kw * cin)) ** 0.5
    return std * jax.random.normal(key, (kh, kw, cin, cout), jnp.float32)


def _bn(key, c, eps=1e-5):
    """Return BN folded as (scale, shift) using synthetic running stats (eval mode)."""
    k1, k2, k3, k4 = jax.random.split(key, 4)
    gamma = jax.random.uniform(k1, (c,), jnp.float32, 0.5, 1.0)
    beta = 0.01 * jax.random.normal(k2, (c,), jnp.float32)
    mean = 0.01 * jax.random.normal(k3, (c,), jnp.float32)
    var = jax.random.uniform(k4, (c,), jnp.float32, 0.9, 1.1)
    s = gamma / jnp.sqrt(var + eps)
    return s, beta - mean * s


def make_params(key, num_classes=6):
    keys = iter(jax.random.split(key, 600))
    nk = lambda: next(keys)
    params = {'stem_w': _conv_w(nk(), 7, 7, 3, 64), 'stem_bn': _bn(nk(), 64)}
    layers = []
    inplanes = 64
    for (planes, blocks, _, _), lp in zip(CFG, PLAN):
        lparams = []
        for (stride, dil, has_ds) in lp:
            blk = {
                'w1': _conv_w(nk(), 1, 1, inplanes, planes), 'bn1': _bn(nk(), planes),
                'w2': _conv_w(nk(), 3, 3, planes, planes), 'bn2': _bn(nk(), planes),
                'w3': _conv_w(nk(), 1, 1, planes, planes * 4), 'bn3': _bn(nk(), planes * 4),
            }
            if has_ds:
                blk['wd'] = _conv_w(nk(), 1, 1, inplanes, planes * 4)
                blk['bnd'] = _bn(nk(), planes * 4)
            lparams.append(blk)
            inplanes = planes * 4
        layers.append(lparams)
    params['layers'] = layers
    # FCNHead: Conv3x3(2048->512, no bias) + BN + ReLU + Dropout + Conv1x1(512->num_classes, bias)
    params['head_w1'] = _conv_w(nk(), 3, 3, 2048, 512)
    params['head_bn1'] = _bn(nk(), 512)
    params['head_w2'] = _conv_w(nk(), 1, 1, 512, num_classes)
    params['head_b2'] = 0.01 * jax.random.normal(nk(), (num_classes,), jnp.float32)
    return params


def bottleneck(x, p, stride, dilation, has_ds):
    # conv1 (1x1) + BN + ReLU
    out = conv2d_bn_act(x, p['w1'], *p['bn1'], relu=True)
    # conv2 (3x3, dilated) + BN + ReLU
    if stride == 1:
        out = conv3x3_s1_bn_act(out, p['w2'], *p['bn2'], dilation=dilation, relu=True)
    else:
        out = conv2d_bn_act(out, p['w2'], *p['bn2'], stride=stride, dilation=dilation,
                            padding=dilation, relu=True)
    # shortcut
    if has_ds:
        identity = conv2d_bn_act(x, p['wd'], *p['bnd'], stride=stride, relu=False)
    else:
        identity = x
    # conv3 (1x1) + BN, with the residual add + ReLU fused into the matmul epilogue
    N, Ho, Wo, Cm = out.shape
    Cout = p['w3'].shape[-1]
    y = matmul_bn_act(out.reshape(-1, Cm), p['w3'].reshape(Cm, Cout),
                      *p['bn3'], relu=True, residual=identity.reshape(-1, Cout))
    return y.reshape(N, Ho, Wo, Cout)


def fcn_forward(params, x_nchw):
    """Equivalent of FCN.forward: returns backbone(x)['out'] — shape (N, num_classes, H, W)."""
    N, C, H, W = x_nchw.shape
    x = jnp.transpose(x_nchw, (0, 2, 3, 1)).astype(jnp.float32)  # -> NHWC
    # stem
    x = conv2d_bn_act(x, params['stem_w'], *params['stem_bn'],
                      stride=2, padding=3, relu=True)
    x = maxpool_3x3_s2p1(x)
    # resnet layers (layer3/4 dilated, output stride 8)
    for lp, layer_params in zip(PLAN, params['layers']):
        for (stride, dil, has_ds), bp in zip(lp, layer_params):
            x = bottleneck(x, bp, stride, dil, has_ds)
    # FCN head
    x = conv3x3_s1_bn_act(x, params['head_w1'], *params['head_bn1'],
                          dilation=1, relu=True)
    # TODO(synk): Dropout(p=0.1) / BatchNorm are eval-mode here (identity / running stats).
    nc = params['head_w2'].shape[-1]
    x = conv2d_bn_act(x, params['head_w2'], jnp.ones((nc,), jnp.float32),
                      params['head_b2'], relu=False)
    # bilinear upsample to input size (align_corners=False), output NCHW
    return upsample_bilinear_to_nchw(x, H, W)


# ----------------------------------------------------------------------------
# Main
# ----------------------------------------------------------------------------

if __name__ == "__main__":
    key = jax.random.PRNGKey(0)
    kp, kx, kchk = jax.random.split(key, 3)
    num_classes = 6

    params = make_params(kp, num_classes=num_classes)
    x = jax.random.normal(kx, (2, 3, 64, 64), jnp.float32)  # NCHW like PyTorch

    # --- numeric sanity checks (bf16 MXU inputs -> loose tolerances) -------------
    k1, k2, k3, k4, k5 = jax.random.split(kchk, 5)

    # (a) im2col + fused-BN matmul path (stride-2 / dilated conv)
    xc = jax.random.normal(k1, (2, 8, 8, 8), jnp.float32)
    wc = 0.1 * jax.random.normal(k2, (3, 3, 8, 16), jnp.float32)
    sc = jax.random.uniform(k3, (16,), jnp.float32, 0.5, 1.5)
    bc = 0.1 * jax.random.normal(k4, (16,), jnp.float32)
    got = conv2d_bn_act(xc, wc, sc, bc, stride=2, dilation=2, padding=2, relu=True)
    ref = lax.conv_general_dilated(xc, wc, (2, 2), ((2, 2), (2, 2)),
                                   rhs_dilation=(2, 2),
                                   dimension_numbers=('NHWC', 'HWIO', 'NHWC'),
                                   precision=lax.Precision.HIGHEST)
    ref = jnp.maximum(ref * sc + bc, 0.0)
    assert jnp.allclose(got, ref, atol=1e-1, rtol=5e-2), "im2col conv kernel mismatch"

    # (b) direct 3x3 stride-1 (dilated) Pallas conv kernel
    kx1, kx2, kx3, kx4 = jax.random.split(k5, 4)
    xd = jax.random.normal(kx1, (2, 8, 8, 64), jnp.float32)
    wd = 0.05 * jax.random.normal(kx2, (3, 3, 64, 128), jnp.float32)
    sd = jax.random.uniform(kx3, (128,), jnp.float32, 0.5, 1.5)
    bd = 0.1 * jax.random.normal(kx4, (128,), jnp.float32)
    got2 = conv3x3_s1_bn_act(xd, wd, sd, bd, dilation=2, relu=True)
    ref2 = lax.conv_general_dilated(xd, wd, (1, 1), ((2, 2), (2, 2)),
                                    rhs_dilation=(2, 2),
                                    dimension_numbers=('NHWC', 'HWIO', 'NHWC'),
                                    precision=lax.Precision.HIGHEST)
    ref2 = jnp.maximum(ref2 * sd + bd, 0.0)
    assert jnp.allclose(got2, ref2, atol=1e-1, rtol=5e-2), "direct conv kernel mismatch"

    # --- full forward -------------------------------------------------------------
    fwd = jax.jit(fcn_forward)
    out = jax.block_until_ready(fwd(params, x))

    assert out.shape == (2, num_classes, 64, 64), out.shape
    assert bool(jnp.all(jnp.isfinite(out)))
    print("KERNEL_OK")
</pallas_src>

<mosaic_0001>
module attributes {stable_mosaic.version = 11 : i64} {
  func.func @_mm_bn_act_kernel(%arg0: i32, %arg1: i32, %arg2: i32, %arg3: memref<32x80xbf16, #tpu.memory_space<vmem>>, %arg4: memref<80x16xbf16, #tpu.memory_space<vmem>>, %arg5: memref<1x16xf32, #tpu.memory_space<vmem>>, %arg6: memref<1x16xf32, #tpu.memory_space<vmem>>, %arg7: memref<32x16xf32, #tpu.memory_space<vmem>>) attributes {dimension_semantics = [#tpu.dimension_semantics<parallel>, #tpu.dimension_semantics<parallel>, #tpu.dimension_semantics<arbitrary>], iteration_bounds = array<i64: 1, 1, 1>, scalar_prefetch = 0 : i64, scratch_operands = 0 : i64, tpu.core_type = #tpu.core_type<tc>, window_params = [{transform_indices = @transform_0, window_bounds = array<i64: 32, 80>}, {transform_indices = @transform_1, window_bounds = array<i64: 80, 16>}, {transform_indices = @transform_2, window_bounds = array<i64: 1, 16>}, {transform_indices = @transform_3, window_bounds = array<i64: 1, 16>}, {transform_indices = @transform_4, window_bounds = array<i64: 32, 16>}]} {
    %c0_i32 = arith.constant 0 : i32
    %0 = arith.cmpi eq, %arg2, %c0_i32 : i32
    %1 = arith.extui %0 : i1 to i32
    %c0_i32_0 = arith.constant 0 : i32
    %2 = arith.cmpi ne, %1, %c0_i32_0 : i32
    scf.if %2 {
      %cst_10 = arith.constant 0.000000e+00 : f32
      %12 = vector.broadcast %cst_10 : f32 to vector<32x16xf32>
      %c0_11 = arith.constant 0 : index
      %c0_12 = arith.constant 0 : index
      %13 = vector.load %arg7[%c0_11, %c0_12] : memref<32x16xf32, #tpu.memory_space<vmem>>, vector<32x16xf32>
      tpu.vector_store %arg7[%c0_11, %c0_12], %12 {strides = array<i32>} : memref<32x16xf32, #tpu.memory_space<vmem>>, vector<32x16xf32>,
    } else {
    }
    %c0 = arith.constant 0 : index
    %c0_1 = arith.constant 0 : index
    %3 = vector.load %arg7[%c0, %c0_1] : memref<32x16xf32, #tpu.memory_space<vmem>>, vector<32x16xf32>
    %c0_2 = arith.constant 0 : index
    %c0_3 = arith.constant 0 : index
    %4 = vector.load %arg3[%c0_2, %c0_3] : memref<32x80xbf16, #tpu.memory_space<vmem>>, vector<32x80xbf16>
    %c0_4 = arith.constant 0 : index
    %c0_5 = arith.constant 0 : index
    %5 = vector.load %arg4[%c0_4, %c0_5] : memref<80x16xbf16, #tpu.memory_space<vmem>>, vector<80x16xbf16>
    %cst = arith.constant dense<0.000000e+00> : vector<32x16xf32>
    %6 = tpu.matmul %4, %5, %cst {dimension_numbers = #tpu.dot_dimension_numbers<[1], [0], [0], [1], [0, 0, 1, 1], [], []>} : vector<32x80xbf16>, vector<80x16xbf16>, vector<32x16xf32> -> vector<32x16xf32>
    %7 = arith.addf %3, %6 : vector<32x16xf32>
    %c0_6 = arith.constant 0 : index
    %c0_7 = arith.constant 0 : index
    %8 = vector.load %arg7[%c0_6, %c0_7] : memref<32x16xf32, #tpu.memory_space<vmem>>, vector<32x16xf32>
    tpu.vector_store %arg7[%c0_6, %c0_7], %7 {strides = array<i32>} : memref<32x16xf32, #tpu.memory_space<vmem>>, vector<32x16xf32>,
    %c0_i32_8 = arith.constant 0 : i32
    %9 = arith.cmpi eq, %arg2, %c0_i32_8 : i32
    %10 = arith.extui %9 : i1 to i32
    %c0_i32_9 = arith.constant 0 : i32
    %11 = arith.cmpi ne, %10, %c0_i32_9 : i32
    scf.if %11 {
      %c0_10 = arith.constant 0 : index
      %c0_11 = arith.constant 0 : index
      %12 = vector.load %arg7[%c0_10, %c0_11] : memref<32x16xf32, #tpu.memory_space<vmem>>, vector<32x16xf32>
      %c0_12 = arith.constant 0 : index
      %c0_13 = arith.constant 0 : index
      %13 = vector.load %arg5[%c0_12, %c0_13] : memref<1x16xf32, #tpu.memory_space<vmem>>, vector<1x16xf32>
      %14 = vector.broadcast %13 : vector<1x16xf32> to vector<32x16xf32>
      %15 = arith.mulf %12, %14 : vector<32x16xf32>
      %c0_14 = arith.constant 0 : index
      %c0_15 = arith.constant 0 : index
      %16 = vector.load %arg6[%c0_14, %c0_15] : memref<1x16xf32, #tpu.memory_space<vmem>>, vector<1x16xf32>
      %17 = vector.broadcast %16 : vector<1x16xf32> to vector<32x16xf32>
      %18 = arith.addf %15, %17 : vector<32x16xf32>
      %cst_16 = arith.constant 0.000000e+00 : f32
      %19 = vector.broadcast %cst_16 : f32 to vector<32x16xf32>
      %20 = arith.maximumf %18, %19 : vector<32x16xf32>
      %c0_17 = arith.constant 0 : index
      %c0_18 = arith.constant 0 : index
      %21 = vector.load %arg7[%c0_17, %c0_18] : memref<32x16xf32, #tpu.memory_space<vmem>>, vector<32x16xf32>
      tpu.vector_store %arg7[%c0_17, %c0_18], %20 {strides = array<i32>} : memref<32x16xf32, #tpu.memory_space<vmem>>, vector<32x16xf32>,
    } else {
    }
    return
  }
  func.func @transform_0(%arg0: i32, %arg1: i32, %arg2: i32) -> (i32, i32) {
    %c0_i32 = arith.constant 0 : i32
    return %arg0, %arg2 : i32, i32
  }
  func.func @transform_1(%arg0: i32, %arg1: i32, %arg2: i32) -> (i32, i32) {
    %c0_i32 = arith.constant 0 : i32
    return %arg2, %arg1 : i32, i32
  }
  func.func @transform_2(%arg0: i32, %arg1: i32, %arg2: i32) -> (i32, i32) {
    %c0_i32 = arith.constant 0 : i32
    %c0_i32_0 = arith.constant 0 : i32
    return %c0_i32, %arg1 : i32, i32
  }
  func.func @transform_3(%arg0: i32, %arg1: i32, %arg2: i32) -> (i32, i32) {
    %c0_i32 = arith.constant 0 : i32
    %c0_i32_0 = arith.constant 0 : i32
    return %c0_i32, %arg1 : i32, i32
  }
  func.func @transform_4(%arg0: i32, %arg1: i32, %arg2: i32) -> (i32, i32) {
    %c0_i32 = arith.constant 0 : i32
    return %arg0, %arg1 : i32, i32
  }
}

</mosaic_0001>

<bundles_post_ra>
// kernel: tpu_custom_call.1
= control target key start
LH: loop header
LB: loop body
LE: loop exit
PB: predicated region body
PF: predicated region fallthrough
CT: control target
= control target key end

     0   :  { %vm22_vm0 = vcmask 130048   ;;  %v231_v1 = vmov 0.0   ;;  %vm85_vm1 = vcmask 654336   ;;  %s356_s1 = inlined_call_operand.vmem [shape: bf16[80,16], index: 1, kind: input, shape index: {}]   ;;  %s357_s4 = inlined_call_operand.vmem [shape: f32[32,16], index: 4, kind: output, shape index: {}]   ;;  %s358_s0 = inlined_call_operand.vmem [shape: bf16[32,80], index: 0, kind: input, shape index: {}]   ;;  %s359_s2 = inlined_call_operand.vmem [shape: f32[1,16], index: 2, kind: input, shape index: {}]   ;;  %s360_s3 = inlined_call_operand.vmem [shape: f32[1,16], index: 3, kind: input, shape index: {}]  }
   0x1   :  { %v224_v0 = vld [vmem:[%s356_s1] sm:$0xff]   ;;  %25 = vst.msk [vmem:[%s357_s4 + $0x10] sm:$0xff] %vm22_vm0, %v231_v1  ;;  %23 = vst.msk [vmem:[%s357_s4] sm:$0xff] %vm22_vm0, %v231_v1  ;;  %v225_v2 = vld [vmem:[%s356_s1 + $0x8] sm:$0xff]  }
   0x2   :  { %24 = vst.msk [vmem:[%s357_s4 + $0x8] sm:$0xff] %vm22_vm0, %v231_v1  ;;  %26 = vst.msk [vmem:[%s357_s4 + $0x18] sm:$0xff] %vm22_vm0, %v231_v1  ;;  %209 = vmatprep.subr.bf16.mxu0 %v224_v0  ;;  %v226_v3 = vld [vmem:[%s356_s1 + $0x10] sm:$0xff]   ;;  %v229_v4 = vld [vmem:[%s358_s0] sm:$0xff]  }
   0x3   :  { %210 = vmatpush3.bf16.msra.mxu0 %v224_v0  ;;  %219 = vmatprep.mubr.msk.bf16.mxu0 %vm85_vm1, %v229_v4  ;;  %v227_v5 = vld [vmem:[%s356_s1 + $0x18] sm:$0xff]   ;;  %v228_v6 = vld [vmem:[%s356_s1 + $0x20] sm:$0xff]   ;;  %v230_v7 = vld [vmem:[%s358_s0 + $0x8] sm:$0xff]  }
   0x4   :  { %211 = vmatprep.subr.bf16.mxu0 %v225_v2  ;;  %v200_v20 = vld [vmem:[%s359_s2] ss:$0 sm:$0xff] }
   0x5   :  { %v201_v22 = vld [vmem:[%s360_s3] ss:$0 sm:$0xff] }
   0x7   :  { %212 = vmatpush3.bf16.msra.mxu0 %v225_v2 }
   0x8   :  { %213 = vmatprep.subr.bf16.mxu0 %v226_v3  ;;  %v29_v8 = vld [vmem:[%s357_s4 + $0x10] sm:$0xff]  ;;  %v27_v9 = vld [vmem:[%s357_s4] sm:$0xff] }
   0x9   :  { %v30_v11 = vld [vmem:[%s357_s4 + $0x18] sm:$0xff]  ;;  %v28_v14 = vld [vmem:[%s357_s4 + $0x8] sm:$0xff] }
   0xb   :  { %214 = vmatpush3.bf16.msra.mxu0 %v226_v3 }
   0xc   :  { %215 = vmatprep.subr.bf16.mxu0 %v227_v5 }
   0xf   :  { %216 = vmatpush3.bf16.msra.mxu0 %v227_v5 }
  0x10   :  { %217 = vmatprep.subr.bf16.mxu0 %v228_v6 }
  0x13   :  { %218 = vmatpush3.bf16.msra.mxu0 %v228_v6 }
  0x16   :  { %220 = vmatmul.mubr.msk.bf16.vlgmr.msra.gmra.mrb[0].mxu0 %vm85_vm1, %v230_v7 }
  0xe9   :  { %v221_v10 = vpop.f32.mrb[0].mxu0 }
  0xea   :  { %v143_v12 = vadd.f32 %v221_v10, %v29_v8  ;;  %v126_v13 = vpop.f32.mrb[1].mxu0 }
  0xeb   :  { %v141_v15 = vadd.f32 %v126_v13, %v27_v9  ;;  %v222_v16 = vpop.f32.mrb[2].mxu0 }
  0xec   :  { %148 = vst.msk [vmem:[%s357_s4 + $0x10] sm:$0xff] %vm22_vm0, %v143_v12  ;;  %v144_v17 = vadd.f32 %v222_v16, %v30_v11  ;;  %v129_v18 = vpop.f32.mrb[3].mxu0 }
  0xed   :  { %146 = vst.msk [vmem:[%s357_s4] sm:$0xff] %vm22_vm0, %v141_v15  ;;  %v142_v19 = vadd.f32 %v129_v18, %v28_v14 }
  0xee   :  { %149 = vst.msk [vmem:[%s357_s4 + $0x18] sm:$0xff] %vm22_vm0, %v144_v17 }
  0xef   :  { %147 = vst.msk [vmem:[%s357_s4 + $0x8] sm:$0xff] %vm22_vm0, %v142_v19 }
  0xf3   :  { %v155_v21 = vld [vmem:[%s357_s4 + $0x10] sm:$0xff] }
  0xf4   :  { %v166_v23 = vmul.f32 %v200_v20, %v155_v21  ;;  %v153_v24 = vld [vmem:[%s357_s4] sm:$0xff] }
  0xf5   :  { %v164_v25 = vmul.f32 %v200_v20, %v153_v24  ;;  %v156_v26 = vld [vmem:[%s357_s4 + $0x18] sm:$0xff] }
  0xf6   :  { %v177_v27 = vadd.f32 %v201_v22, %v166_v23  ;;  %v167_v28 = vmul.f32 %v200_v20, %v156_v26  ;;  %v154_v29 = vld [vmem:[%s357_s4 + $0x8] sm:$0xff] }
  0xf7   :  { %v175_v30 = vadd.f32 %v201_v22, %v164_v25  ;;  %v165_v31 = vmul.f32 %v200_v20, %v154_v29 }
  0xf8   :  { %v181_v32 = vmax.f32 %v177_v27, 0.0  ;;  %v178_v33 = vadd.f32 %v201_v22, %v167_v28 }
  0xf9   :  { %v179_v34 = vmax.f32 %v175_v30, 0.0  ;;  %v176_v35 = vadd.f32 %v201_v22, %v165_v31 }
  0xfa   :  { %185 = vst.msk [vmem:[%s357_s4 + $0x10] sm:$0xff] %vm22_vm0, %v181_v32  ;;  %v182_v36 = vmax.f32 %v178_v33, 0.0 }
  0xfb   :  { %183 = vst.msk [vmem:[%s357_s4] sm:$0xff] %vm22_vm0, %v179_v34  ;;  %v180_v37 = vmax.f32 %v176_v35, 0.0 }
  0xfc   :  { %186 = vst.msk [vmem:[%s357_s4 + $0x18] sm:$0xff] %vm22_vm0, %v182_v36 }
  0xfd   :  { %184 = vst.msk [vmem:[%s357_s4 + $0x8] sm:$0xff] %vm22_vm0, %v180_v37 }

</bundles_post_ra>
